<compile_context>
chip_gen: v7x
topology: tpu7x:2x2x1
jax: 0.10.0
libtpu: 0.0.40
codegen_flags: <defaults>
</compile_context>

<pallas_src>
import functools

import numpy as np

import jax
import jax.numpy as jnp
from jax import lax
from jax.experimental import pallas as pl
from jax.experimental.pallas import tpu as pltpu


def _lif_kernel(x_ref, spike_ref, mem_out_ref, mem_ref, *,
                tau, thresh, chunk_t, total_steps, unroll):
    k = pl.program_id(1)  # time-chunk index (sequential / "arbitrary" axis)

    # init_mem = 0.0 at the first time chunk of this neuron block
    @pl.when(k == 0)
    def _():
        mem_ref[...] = jnp.zeros_like(mem_ref)

    tau_f = jnp.float32(tau)
    thresh_f = jnp.float32(thresh)
    zero_f = jnp.float32(0.0)
    keep_f = jnp.float32(1.0) - thresh_f      # == (1 - spike) when fired
    ragged_tail = (total_steps % chunk_t) != 0
    base = k * chunk_t

    def body(s, mem):
        # mem = tau * mem + x[t]
        new = tau_f * mem + x_ref[s].astype(jnp.float32)
        # ZIF.forward: (mem - thresh >= 0); spike = 1{fired} * thresh
        fired = new >= thresh_f
        spike_ref[s] = jnp.where(fired, thresh_f, zero_f).astype(spike_ref.dtype)
        # reset: mem = mem * (1 - spike)  (bit-identical since spike == thresh)
        new = jnp.where(fired, new * keep_f, new)
        if ragged_tail:
            # ragged last time chunk: freeze the membrane past `total_steps`
            # (out-of-bounds spike rows are discarded by Pallas on writeback)
            new = jnp.where(base + s < total_steps, new, mem)
        return new

    mem = lax.fori_loop(0, chunk_t, body, mem_ref[...], unroll=unroll)
    mem_ref[...] = mem

    # expose final membrane state (== self.current_mem in the PyTorch module)
    @pl.when(k == pl.num_programs(1) - 1)
    def _():
        mem_out_ref[...] = mem.astype(mem_out_ref.dtype)


def _tpu_defaults():
    """(tensorcores_per_chip, vmem_limit_cap_bytes) for the local device."""
    cores, cap = 1, 48 * 2**20            # conservative default
    try:
        kind = jax.devices()[0].device_kind.lower()
        if "v7" in kind:
            cores, cap = 2, 48 * 2**20    # 64 MiB/TC physical -> clamp at 48
        elif ("v4" in kind) or ("v5" in kind) or ("v6" in kind):
            cores, cap = 1, 96 * 2**20    # 128 MiB physical
    except Exception:
        pass
    try:  # refine from the hardware query when available
        cap = min(cap, int(0.75 * pltpu.get_tpu_info().vmem_capacity_bytes))
    except Exception:
        pass
    return cores, cap


def _pick_block(extent, granule, parts):
    """Split the neuron axis (`extent` rows or lanes) into `parts` blocks that
    are multiples of `granule`; the last block may be ragged (Pallas masks it,
    so there is never any array padding)."""
    if parts <= 1:
        return extent
    per_part = -(-extent // parts)
    block = -(-per_part // granule) * granule
    return extent if block >= extent else block


def lif_forward(x, *, T, tau=1.0, thresh=1.0, gama=1.0, spike_dtype=None,
                max_chunk_t=128, neuron_blocks=None):
    """LIF forward. x: [steps, T*B, D] (episode branch) or [T*B, *feat].

    Returns (spikes, final_mem). `gama` only affects ZIF's surrogate backward
    pass, not the forward. `spike_dtype=jnp.bfloat16` halves spike write
    traffic (exact when thresh is bf16-representable).
    """
    # TODO(synk): the optional external initial `mem` argument of LIF.forward
    # is not supported; only the default init_mem = 0.0 path is implemented.
    if x.ndim != 3:
        # single-episode branch of LIF.forward (x: [T*B, *feature_dims])
        feat = x.shape[1:]
        spikes, mem = lif_forward(x.reshape(1, x.shape[0], -1), T=T, tau=tau,
                                  thresh=thresh, gama=gama,
                                  spike_dtype=spike_dtype,
                                  max_chunk_t=max_chunk_t,
                                  neuron_blocks=neuron_blocks)
        return spikes.reshape(x.shape), mem.reshape((x.shape[0] // T,) + feat)

    steps, TB, D = x.shape
    assert TB % T == 0, "leading batch*time dim must be divisible by T"
    B = TB // T
    total = steps * T
    N = B * D

    sp_dtype = x.dtype if spike_dtype is None else np.dtype(spike_dtype)
    in_b = x.dtype.itemsize
    out_b = sp_dtype.itemsize
    num_cores, limit_cap = _tpu_defaults()

    # ---- neuron-axis layout: always a free view, never an HBM pad/copy -----
    x2 = x.reshape(total, N)                         # time-major, free view
    if N % 128 == 0:
        # lane-dense slab: neurons on (sublane, lane) -> full-vreg VPU work
        r_dim, lane = N // 128, 128
        x3 = x2.reshape(total, r_dim, 128)
        granule = 16 if 2 in (in_b, out_b) else 8    # 16-bit types: (16,128) tile
        extent, elems_per_unit = r_dim, 128
        neuron_rows = True
    else:
        # ragged N: neurons on lanes only; ragged last block masked by Pallas
        r_dim, lane = 1, N
        x3 = x2.reshape(total, 1, N)
        granule, extent, elems_per_unit = 128, N, 1
        neuron_rows = False

    # ---- tile sizing: core-aware split, ~4 MiB blocks, VMEM-budget checked --
    parts = num_cores if neuron_blocks is None else max(1, int(neuron_blocks))
    block = _pick_block(extent, granule, parts)
    budget = limit_cap // 2                          # headroom for Mosaic

    def footprint(blk, ct):
        e = blk * elems_per_unit
        return (2 * ct * e * (in_b + out_b)          # double-buffered x + spikes
                + 2 * e * 4                          # double-buffered mem_out
                + e * 4)                             # membrane VMEM scratch

    while footprint(block, 1) > budget and block > granule:
        block = max(granule, (block // 2 // granule) * granule)
    e = block * elems_per_unit
    chunk_t = max(1, min(total, int(max_chunk_t),
                         (4 * 2**20) // max(1, e * in_b)))
    while footprint(block, chunk_t) > budget and chunk_t > 1:
        chunk_t = max(1, chunk_t // 2)
    if chunk_t > 32:                                 # partial unroll, clean divisor
        chunk_t = (chunk_t // 8) * 8
        unroll = 8
    else:
        unroll = True

    nb = pl.cdiv(extent, block)
    num_chunks = pl.cdiv(total, chunk_t)
    vmem_limit = int(min(max(2 * footprint(block, chunk_t), 16 * 2**20),
                         limit_cap))

    if neuron_rows:
        blk3 = (chunk_t, block, 128)
        idx3 = lambda j, k: (k, j, 0)
        mem_shape, mem_blk = (r_dim, 128), (block, 128)
        mem_idx = lambda j, k: (j, 0)
    else:
        blk3 = (chunk_t, 1, block)
        idx3 = lambda j, k: (k, 0, j)
        mem_shape, mem_blk = (1, N), (1, block)
        mem_idx = lambda j, k: (0, j)

    kernel = functools.partial(
        _lif_kernel, tau=float(tau), thresh=float(thresh), chunk_t=chunk_t,
        total_steps=total, unroll=unroll)

    spikes3, mem2 = pl.pallas_call(
        kernel,
        out_shape=(
            jax.ShapeDtypeStruct((total, r_dim, lane), sp_dtype),
            jax.ShapeDtypeStruct(mem_shape, jnp.float32),
        ),
        grid_spec=pltpu.PrefetchScalarGridSpec(
            num_scalar_prefetch=0,
            # (parallel neuron blocks, sequential time chunks) -- seq. axis last
            grid=(nb, num_chunks),
            in_specs=[pl.BlockSpec(blk3, idx3)],
            out_specs=(
                pl.BlockSpec(blk3, idx3),
                pl.BlockSpec(mem_blk, mem_idx),
            ),
            scratch_shapes=[pltpu.VMEM(mem_blk, jnp.float32)],
        ),
        compiler_params=pltpu.CompilerParams(
            # TODO(synk): evaluate pltpu.CORE_PARALLEL for the neuron axis on
            # v7x once profiled; plain "parallel" is the safe default here.
            dimension_semantics=("parallel", "arbitrary"),
            vmem_limit_bytes=vmem_limit,
        ),
    )(x3)

    spikes = spikes3.reshape(total, N).reshape(steps, TB, D)   # free views
    final_mem = mem2.reshape(B, D)
    return spikes, final_mem


def lif_reference(x, *, T, tau=1.0, thresh=1.0):
    """Pure-JAX reference mirroring the PyTorch loop (3-D branch)."""
    steps, TB, D = x.shape
    B = TB // T
    mem = jnp.zeros((B, D), jnp.float32)
    outs = []
    for s in range(steps):
        xs = x[s].reshape(T, B, D)
        spikes = []
        for t in range(T):
            mem = tau * mem + xs[t]
            spike = (mem - thresh >= 0).astype(jnp.float32) * thresh
            mem = mem * (1.0 - spike)
            spikes.append(spike)
        outs.append(jnp.stack(spikes, 0).reshape(TB, D))
    return jnp.stack(outs, 0), mem


if __name__ == "__main__":
    key = jax.random.PRNGKey(0)
    k1, k2, k3, k4, k5 = jax.random.split(key, 5)

    # Test 1: tiny ragged-N path (N = 64 < 128), single time chunk.
    steps, T, B, D = 2, 4, 2, 32
    x = jax.random.normal(k1, (steps, T * B, D), dtype=jnp.float32)
    spikes, mem = lif_forward(x, T=T, tau=1.0, thresh=1.0, gama=1.0)
    jax.block_until_ready(spikes)
    rs, rm = lif_reference(x, T=T, tau=1.0, thresh=1.0)
    assert spikes.shape == x.shape
    assert jnp.allclose(spikes, rs, atol=1e-6), "spike mismatch (test 1)"
    assert jnp.allclose(mem, rm, atol=1e-6), "membrane mismatch (test 1)"

    # Test 2: lane-dense slab path (N % 128 == 0), forced 2 neuron blocks
    # (as on v7x) and a ragged last time chunk (12 % 8 != 0).
    steps, T, B, D = 3, 4, 2, 1024
    x = jax.random.normal(k2, (steps, T * B, D), dtype=jnp.float32)
    spikes, mem = lif_forward(x, T=T, tau=1.0, thresh=1.0,
                              max_chunk_t=8, neuron_blocks=2)
    jax.block_until_ready(spikes)
    rs, rm = lif_reference(x, T=T, tau=1.0, thresh=1.0)
    assert jnp.allclose(spikes, rs, atol=1e-6), "spike mismatch (test 2)"
    assert jnp.allclose(mem, rm, atol=1e-6), "membrane mismatch (test 2)"

    # Test 3: ragged-N path (N = 1200), tau != 1, ragged time chunks (16 % 6).
    steps, T, B, D = 4, 4, 4, 300
    x = jax.random.normal(k3, (steps, T * B, D), dtype=jnp.float32)
    spikes, mem = lif_forward(x, T=T, tau=0.9, thresh=1.0, max_chunk_t=6)
    jax.block_until_ready(spikes)
    rs, rm = lif_reference(x, T=T, tau=0.9, thresh=1.0)
    assert jnp.allclose(spikes, rs, atol=1e-5), "spike mismatch (test 3)"
    assert jnp.allclose(mem, rm, atol=1e-5), "membrane mismatch (test 3)"

    # Test 4: bf16 spike output (exact: spikes in {0, thresh}) + partial-unroll
    # path (chunk_t = 64 > 32) on the slab layout.
    steps, T, B, D = 8, 8, 2, 1024
    x = jax.random.normal(k4, (steps, T * B, D), dtype=jnp.float32)
    spikes, mem = lif_forward(x, T=T, tau=0.9, thresh=1.0,
                              spike_dtype=jnp.bfloat16)
    jax.block_until_ready(spikes)
    rs, rm = lif_reference(x, T=T, tau=0.9, thresh=1.0)
    assert spikes.dtype == jnp.bfloat16
    assert jnp.allclose(spikes.astype(jnp.float32), rs, atol=1e-6), \
        "spike mismatch (test 4)"
    assert jnp.allclose(mem, rm, atol=1e-5), "membrane mismatch (test 4)"

    # Test 5: non-episode branch (4-D x -> flattened features).
    T = 4
    x = jax.random.normal(k5, (T * 2, 3, 4, 5), dtype=jnp.float32)
    spikes, mem = lif_forward(x, T=T, tau=0.8, thresh=1.0)
    jax.block_until_ready(spikes)
    rs, rm = lif_reference(x.reshape(1, T * 2, -1), T=T, tau=0.8, thresh=1.0)
    assert spikes.shape == x.shape and mem.shape == (2, 3, 4, 5)
    assert jnp.allclose(spikes.reshape(1, T * 2, -1), rs, atol=1e-6), \
        "spike mismatch (test 5)"
    assert jnp.allclose(mem.reshape(2, -1), rm.reshape(2, -1), atol=1e-6), \
        "membrane mismatch (test 5)"

    print("KERNEL_OK")
</pallas_src>

<mosaic_0001>
module attributes {stable_mosaic.version = 11 : i64} {
  func.func @_lif_kernel(%arg0: i32, %arg1: i32, %arg2: memref<8x1x64xf32, #tpu.memory_space<vmem>>, %arg3: memref<8x1x64xf32, #tpu.memory_space<vmem>>, %arg4: memref<1x64xf32, #tpu.memory_space<vmem>>, %arg5: memref<1x64xf32, #tpu.memory_space<vmem>>) attributes {dimension_semantics = [#tpu.dimension_semantics<parallel>, #tpu.dimension_semantics<arbitrary>], iteration_bounds = array<i64: 1, 1>, scalar_prefetch = 0 : i64, scratch_operands = 1 : i64, tpu.core_type = #tpu.core_type<tc>, window_params = [{transform_indices = @transform_0, window_bounds = array<i64: 8, 1, 64>}, {transform_indices = @transform_1, window_bounds = array<i64: 8, 1, 64>}, {transform_indices = @transform_2, window_bounds = array<i64: 1, 64>}]} {
    %c0_i32 = arith.constant 0 : i32
    %0 = arith.cmpi eq, %arg1, %c0_i32 : i32
    %1 = arith.extui %0 : i1 to i32
    %c0_i32_0 = arith.constant 0 : i32
    %2 = arith.cmpi ne, %1, %c0_i32_0 : i32
    scf.if %2 {
      %cst_43 = arith.constant 0.000000e+00 : f32
      %153 = vector.broadcast %cst_43 : f32 to vector<1x64xf32>
      %c0_44 = arith.constant 0 : index
      %c0_45 = arith.constant 0 : index
      %154 = vector.load %arg5[%c0_44, %c0_45] : memref<1x64xf32, #tpu.memory_space<vmem>>, vector<1x64xf32>
      tpu.vector_store %arg5[%c0_44, %c0_45], %153 {strides = array<i32>} : memref<1x64xf32, #tpu.memory_space<vmem>>, vector<1x64xf32>,
    } else {
    }
    %cst = arith.constant 1.000000e+00 : f32
    %cst_1 = arith.constant 1.000000e+00 : f32
    %3 = arith.subf %cst, %cst_1 : f32
    %c0 = arith.constant 0 : index
    %c0_2 = arith.constant 0 : index
    %4 = vector.load %arg5[%c0, %c0_2] : memref<1x64xf32, #tpu.memory_space<vmem>>, vector<1x64xf32>
    %cst_3 = arith.constant 1.000000e+00 : f32
    %cst_4 = arith.constant 1.000000e+00 : f32
    %cst_5 = arith.constant 0.000000e+00 : f32
    %c0_i32_6 = arith.constant 0 : i32
    %5 = vector.broadcast %cst_3 : f32 to vector<1x64xf32>
    %6 = arith.mulf %5, %4 : vector<1x64xf32>
    %7 = arith.index_cast %c0_i32_6 : i32 to index
    %c0_7 = arith.constant 0 : index
    %c0_8 = arith.constant 0 : index
    %8 = vector.load %arg2[%7, %c0_7, %c0_8] : memref<8x1x64xf32, #tpu.memory_space<vmem>>, vector<1x1x64xf32>
    %9 = vector.shape_cast %8 : vector<1x1x64xf32> to vector<1x64xf32>
    %10 = arith.addf %6, %9 : vector<1x64xf32>
    %11 = vector.broadcast %cst_4 : f32 to vector<1x64xf32>
    %12 = arith.cmpf oge, %10, %11 : vector<1x64xf32>
    %13 = vector.broadcast %cst_4 : f32 to vector<1x64xf32>
    %14 = vector.broadcast %cst_5 : f32 to vector<1x64xf32>
    %15 = arith.select %12, %13, %14 : vector<1x64xi1>, vector<1x64xf32>
    %16 = arith.index_cast %c0_i32_6 : i32 to index
    %c0_9 = arith.constant 0 : index
    %c0_10 = arith.constant 0 : index
    %17 = vector.load %arg3[%16, %c0_9, %c0_10] : memref<8x1x64xf32, #tpu.memory_space<vmem>>, vector<1x1x64xf32>
    %18 = vector.shape_cast %17 : vector<1x1x64xf32> to vector<1x64xf32>
    %19 = vector.shape_cast %15 : vector<1x64xf32> to vector<1x1x64xf32>
    tpu.vector_store %arg3[%16, %c0_9, %c0_10], %19 {strides = array<i32>} : memref<8x1x64xf32, #tpu.memory_space<vmem>>, vector<1x1x64xf32>,
    %20 = vector.broadcast %3 : f32 to vector<1x64xf32>
    %21 = arith.mulf %10, %20 : vector<1x64xf32>
    %22 = arith.select %12, %21, %10 : vector<1x64xi1>, vector<1x64xf32>
    %c1_i32 = arith.constant 1 : i32
    %23 = vector.broadcast %cst_3 : f32 to vector<1x64xf32>
    %24 = arith.mulf %23, %22 : vector<1x64xf32>
    %25 = arith.index_cast %c1_i32 : i32 to index
    %c0_11 = arith.constant 0 : index
    %c0_12 = arith.constant 0 : index
    %26 = vector.load %arg2[%25, %c0_11, %c0_12] : memref<8x1x64xf32, #tpu.memory_space<vmem>>, vector<1x1x64xf32>
    %27 = vector.shape_cast %26 : vector<1x1x64xf32> to vector<1x64xf32>
    %28 = arith.addf %24, %27 : vector<1x64xf32>
    %29 = vector.broadcast %cst_4 : f32 to vector<1x64xf32>
    %30 = arith.cmpf oge, %28, %29 : vector<1x64xf32>
    %31 = vector.broadcast %cst_4 : f32 to vector<1x64xf32>
    %32 = vector.broadcast %cst_5 : f32 to vector<1x64xf32>
    %33 = arith.select %30, %31, %32 : vector<1x64xi1>, vector<1x64xf32>
    %34 = arith.index_cast %c1_i32 : i32 to index
    %c0_13 = arith.constant 0 : index
    %c0_14 = arith.constant 0 : index
    %35 = vector.load %arg3[%34, %c0_13, %c0_14] : memref<8x1x64xf32, #tpu.memory_space<vmem>>, vector<1x1x64xf32>
    %36 = vector.shape_cast %35 : vector<1x1x64xf32> to vector<1x64xf32>
    %37 = vector.shape_cast %33 : vector<1x64xf32> to vector<1x1x64xf32>
    tpu.vector_store %arg3[%34, %c0_13, %c0_14], %37 {strides = array<i32>} : memref<8x1x64xf32, #tpu.memory_space<vmem>>, vector<1x1x64xf32>,
    %38 = vector.broadcast %3 : f32 to vector<1x64xf32>
    %39 = arith.mulf %28, %38 : vector<1x64xf32>
    %40 = arith.select %30, %39, %28 : vector<1x64xi1>, vector<1x64xf32>
    %c2_i32 = arith.constant 2 : i32
    %41 = vector.broadcast %cst_3 : f32 to vector<1x64xf32>
    %42 = arith.mulf %41, %40 : vector<1x64xf32>
    %43 = arith.index_cast %c2_i32 : i32 to index
    %c0_15 = arith.constant 0 : index
    %c0_16 = arith.constant 0 : index
    %44 = vector.load %arg2[%43, %c0_15, %c0_16] : memref<8x1x64xf32, #tpu.memory_space<vmem>>, vector<1x1x64xf32>
    %45 = vector.shape_cast %44 : vector<1x1x64xf32> to vector<1x64xf32>
    %46 = arith.addf %42, %45 : vector<1x64xf32>
    %47 = vector.broadcast %cst_4 : f32 to vector<1x64xf32>
    %48 = arith.cmpf oge, %46, %47 : vector<1x64xf32>
    %49 = vector.broadcast %cst_4 : f32 to vector<1x64xf32>
    %50 = vector.broadcast %cst_5 : f32 to vector<1x64xf32>
    %51 = arith.select %48, %49, %50 : vector<1x64xi1>, vector<1x64xf32>
    %52 = arith.index_cast %c2_i32 : i32 to index
    %c0_17 = arith.constant 0 : index
    %c0_18 = arith.constant 0 : index
    %53 = vector.load %arg3[%52, %c0_17, %c0_18] : memref<8x1x64xf32, #tpu.memory_space<vmem>>, vector<1x1x64xf32>
    %54 = vector.shape_cast %53 : vector<1x1x64xf32> to vector<1x64xf32>
    %55 = vector.shape_cast %51 : vector<1x64xf32> to vector<1x1x64xf32>
    tpu.vector_store %arg3[%52, %c0_17, %c0_18], %55 {strides = array<i32>} : memref<8x1x64xf32, #tpu.memory_space<vmem>>, vector<1x1x64xf32>,
    %56 = vector.broadcast %3 : f32 to vector<1x64xf32>
    %57 = arith.mulf %46, %56 : vector<1x64xf32>
    %58 = arith.select %48, %57, %46 : vector<1x64xi1>, vector<1x64xf32>
    %c3_i32 = arith.constant 3 : i32
    %59 = vector.broadcast %cst_3 : f32 to vector<1x64xf32>
    %60 = arith.mulf %59, %58 : vector<1x64xf32>
    %61 = arith.index_cast %c3_i32 : i32 to index
    %c0_19 = arith.constant 0 : index
    %c0_20 = arith.constant 0 : index
    %62 = vector.load %arg2[%61, %c0_19, %c0_20] : memref<8x1x64xf32, #tpu.memory_space<vmem>>, vector<1x1x64xf32>
    %63 = vector.shape_cast %62 : vector<1x1x64xf32> to vector<1x64xf32>
    %64 = arith.addf %60, %63 : vector<1x64xf32>
    %65 = vector.broadcast %cst_4 : f32 to vector<1x64xf32>
    %66 = arith.cmpf oge, %64, %65 : vector<1x64xf32>
    %67 = vector.broadcast %cst_4 : f32 to vector<1x64xf32>
    %68 = vector.broadcast %cst_5 : f32 to vector<1x64xf32>
    %69 = arith.select %66, %67, %68 : vector<1x64xi1>, vector<1x64xf32>
    %70 = arith.index_cast %c3_i32 : i32 to index
    %c0_21 = arith.constant 0 : index
    %c0_22 = arith.constant 0 : index
    %71 = vector.load %arg3[%70, %c0_21, %c0_22] : memref<8x1x64xf32, #tpu.memory_space<vmem>>, vector<1x1x64xf32>
    %72 = vector.shape_cast %71 : vector<1x1x64xf32> to vector<1x64xf32>
    %73 = vector.shape_cast %69 : vector<1x64xf32> to vector<1x1x64xf32>
    tpu.vector_store %arg3[%70, %c0_21, %c0_22], %73 {strides = array<i32>} : memref<8x1x64xf32, #tpu.memory_space<vmem>>, vector<1x1x64xf32>,
    %74 = vector.broadcast %3 : f32 to vector<1x64xf32>
    %75 = arith.mulf %64, %74 : vector<1x64xf32>
    %76 = arith.select %66, %75, %64 : vector<1x64xi1>, vector<1x64xf32>
    %c4_i32 = arith.constant 4 : i32
    %77 = vector.broadcast %cst_3 : f32 to vector<1x64xf32>
    %78 = arith.mulf %77, %76 : vector<1x64xf32>
    %79 = arith.index_cast %c4_i32 : i32 to index
    %c0_23 = arith.constant 0 : index
    %c0_24 = arith.constant 0 : index
    %80 = vector.load %arg2[%79, %c0_23, %c0_24] : memref<8x1x64xf32, #tpu.memory_space<vmem>>, vector<1x1x64xf32>
    %81 = vector.shape_cast %80 : vector<1x1x64xf32> to vector<1x64xf32>
    %82 = arith.addf %78, %81 : vector<1x64xf32>
    %83 = vector.broadcast %cst_4 : f32 to vector<1x64xf32>
    %84 = arith.cmpf oge, %82, %83 : vector<1x64xf32>
    %85 = vector.broadcast %cst_4 : f32 to vector<1x64xf32>
    %86 = vector.broadcast %cst_5 : f32 to vector<1x64xf32>
    %87 = arith.select %84, %85, %86 : vector<1x64xi1>, vector<1x64xf32>
    %88 = arith.index_cast %c4_i32 : i32 to index
    %c0_25 = arith.constant 0 : index
    %c0_26 = arith.constant 0 : index
    %89 = vector.load %arg3[%88, %c0_25, %c0_26] : memref<8x1x64xf32, #tpu.memory_space<vmem>>, vector<1x1x64xf32>
    %90 = vector.shape_cast %89 : vector<1x1x64xf32> to vector<1x64xf32>
    %91 = vector.shape_cast %87 : vector<1x64xf32> to vector<1x1x64xf32>
    tpu.vector_store %arg3[%88, %c0_25, %c0_26], %91 {strides = array<i32>} : memref<8x1x64xf32, #tpu.memory_space<vmem>>, vector<1x1x64xf32>,
    %92 = vector.broadcast %3 : f32 to vector<1x64xf32>
    %93 = arith.mulf %82, %92 : vector<1x64xf32>
    %94 = arith.select %84, %93, %82 : vector<1x64xi1>, vector<1x64xf32>
    %c5_i32 = arith.constant 5 : i32
    %95 = vector.broadcast %cst_3 : f32 to vector<1x64xf32>
    %96 = arith.mulf %95, %94 : vector<1x64xf32>
    %97 = arith.index_cast %c5_i32 : i32 to index
    %c0_27 = arith.constant 0 : index
    %c0_28 = arith.constant 0 : index
    %98 = vector.load %arg2[%97, %c0_27, %c0_28] : memref<8x1x64xf32, #tpu.memory_space<vmem>>, vector<1x1x64xf32>
    %99 = vector.shape_cast %98 : vector<1x1x64xf32> to vector<1x64xf32>
    %100 = arith.addf %96, %99 : vector<1x64xf32>
    %101 = vector.broadcast %cst_4 : f32 to vector<1x64xf32>
    %102 = arith.cmpf oge, %100, %101 : vector<1x64xf32>
    %103 = vector.broadcast %cst_4 : f32 to vector<1x64xf32>
    %104 = vector.broadcast %cst_5 : f32 to vector<1x64xf32>
    %105 = arith.select %102, %103, %104 : vector<1x64xi1>, vector<1x64xf32>
    %106 = arith.index_cast %c5_i32 : i32 to index
    %c0_29 = arith.constant 0 : index
    %c0_30 = arith.constant 0 : index
    %107 = vector.load %arg3[%106, %c0_29, %c0_30] : memref<8x1x64xf32, #tpu.memory_space<vmem>>, vector<1x1x64xf32>
    %108 = vector.shape_cast %107 : vector<1x1x64xf32> to vector<1x64xf32>
    %109 = vector.shape_cast %105 : vector<1x64xf32> to vector<1x1x64xf32>
    tpu.vector_store %arg3[%106, %c0_29, %c0_30], %109 {strides = array<i32>} : memref<8x1x64xf32, #tpu.memory_space<vmem>>, vector<1x1x64xf32>,
    %110 = vector.broadcast %3 : f32 to vector<1x64xf32>
    %111 = arith.mulf %100, %110 : vector<1x64xf32>
    %112 = arith.select %102, %111, %100 : vector<1x64xi1>, vector<1x64xf32>
    %c6_i32 = arith.constant 6 : i32
    %113 = vector.broadcast %cst_3 : f32 to vector<1x64xf32>
    %114 = arith.mulf %113, %112 : vector<1x64xf32>
    %115 = arith.index_cast %c6_i32 : i32 to index
    %c0_31 = arith.constant 0 : index
    %c0_32 = arith.constant 0 : index
    %116 = vector.load %arg2[%115, %c0_31, %c0_32] : memref<8x1x64xf32, #tpu.memory_space<vmem>>, vector<1x1x64xf32>
    %117 = vector.shape_cast %116 : vector<1x1x64xf32> to vector<1x64xf32>
    %118 = arith.addf %114, %117 : vector<1x64xf32>
    %119 = vector.broadcast %cst_4 : f32 to vector<1x64xf32>
    %120 = arith.cmpf oge, %118, %119 : vector<1x64xf32>
    %121 = vector.broadcast %cst_4 : f32 to vector<1x64xf32>
    %122 = vector.broadcast %cst_5 : f32 to vector<1x64xf32>
    %123 = arith.select %120, %121, %122 : vector<1x64xi1>, vector<1x64xf32>
    %124 = arith.index_cast %c6_i32 : i32 to index
    %c0_33 = arith.constant 0 : index
    %c0_34 = arith.constant 0 : index
    %125 = vector.load %arg3[%124, %c0_33, %c0_34] : memref<8x1x64xf32, #tpu.memory_space<vmem>>, vector<1x1x64xf32>
    %126 = vector.shape_cast %125 : vector<1x1x64xf32> to vector<1x64xf32>
    %127 = vector.shape_cast %123 : vector<1x64xf32> to vector<1x1x64xf32>
    tpu.vector_store %arg3[%124, %c0_33, %c0_34], %127 {strides = array<i32>} : memref<8x1x64xf32, #tpu.memory_space<vmem>>, vector<1x1x64xf32>,
    %128 = vector.broadcast %3 : f32 to vector<1x64xf32>
    %129 = arith.mulf %118, %128 : vector<1x64xf32>
    %130 = arith.select %120, %129, %118 : vector<1x64xi1>, vector<1x64xf32>
    %c7_i32 = arith.constant 7 : i32
    %131 = vector.broadcast %cst_3 : f32 to vector<1x64xf32>
    %132 = arith.mulf %131, %130 : vector<1x64xf32>
    %133 = arith.index_cast %c7_i32 : i32 to index
    %c0_35 = arith.constant 0 : index
    %c0_36 = arith.constant 0 : index
    %134 = vector.load %arg2[%133, %c0_35, %c0_36] : memref<8x1x64xf32, #tpu.memory_space<vmem>>, vector<1x1x64xf32>
    %135 = vector.shape_cast %134 : vector<1x1x64xf32> to vector<1x64xf32>
    %136 = arith.addf %132, %135 : vector<1x64xf32>
    %137 = vector.broadcast %cst_4 : f32 to vector<1x64xf32>
    %138 = arith.cmpf oge, %136, %137 : vector<1x64xf32>
    %139 = vector.broadcast %cst_4 : f32 to vector<1x64xf32>
    %140 = vector.broadcast %cst_5 : f32 to vector<1x64xf32>
    %141 = arith.select %138, %139, %140 : vector<1x64xi1>, vector<1x64xf32>
    %142 = arith.index_cast %c7_i32 : i32 to index
    %c0_37 = arith.constant 0 : index
    %c0_38 = arith.constant 0 : index
    %143 = vector.load %arg3[%142, %c0_37, %c0_38] : memref<8x1x64xf32, #tpu.memory_space<vmem>>, vector<1x1x64xf32>
    %144 = vector.shape_cast %143 : vector<1x1x64xf32> to vector<1x64xf32>
    %145 = vector.shape_cast %141 : vector<1x64xf32> to vector<1x1x64xf32>
    tpu.vector_store %arg3[%142, %c0_37, %c0_38], %145 {strides = array<i32>} : memref<8x1x64xf32, #tpu.memory_space<vmem>>, vector<1x1x64xf32>,
    %146 = vector.broadcast %3 : f32 to vector<1x64xf32>
    %147 = arith.mulf %136, %146 : vector<1x64xf32>
    %148 = arith.select %138, %147, %136 : vector<1x64xi1>, vector<1x64xf32>
    %c8_i32 = arith.constant 8 : i32
    %c0_39 = arith.constant 0 : index
    %c0_40 = arith.constant 0 : index
    %149 = vector.load %arg5[%c0_39, %c0_40] : memref<1x64xf32, #tpu.memory_space<vmem>>, vector<1x64xf32>
    tpu.vector_store %arg5[%c0_39, %c0_40], %148 {strides = array<i32>} : memref<1x64xf32, #tpu.memory_space<vmem>>, vector<1x64xf32>,
    %c0_i32_41 = arith.constant 0 : i32
    %150 = arith.cmpi eq, %arg1, %c0_i32_41 : i32
    %151 = arith.extui %150 : i1 to i32
    %c0_i32_42 = arith.constant 0 : i32
    %152 = arith.cmpi ne, %151, %c0_i32_42 : i32
    scf.if %152 {
      %c0_43 = arith.constant 0 : index
      %c0_44 = arith.constant 0 : index
      %153 = vector.load %arg4[%c0_43, %c0_44] : memref<1x64xf32, #tpu.memory_space<vmem>>, vector<1x64xf32>
      tpu.vector_store %arg4[%c0_43, %c0_44], %148 {strides = array<i32>} : memref<1x64xf32, #tpu.memory_space<vmem>>, vector<1x64xf32>,
    } else {
    }
    return
  }
  func.func @transform_0(%arg0: i32, %arg1: i32) -> (i32, i32, i32) {
    %c0_i32 = arith.constant 0 : i32
    %c0_i32_0 = arith.constant 0 : i32
    return %arg1, %c0_i32, %arg0 : i32, i32, i32
  }
  func.func @transform_1(%arg0: i32, %arg1: i32) -> (i32, i32, i32) {
    %c0_i32 = arith.constant 0 : i32
    %c0_i32_0 = arith.constant 0 : i32
    return %arg1, %c0_i32, %arg0 : i32, i32, i32
  }
  func.func @transform_2(%arg0: i32, %arg1: i32) -> (i32, i32) {
    %c0_i32 = arith.constant 0 : i32
    %c0_i32_0 = arith.constant 0 : i32
    return %c0_i32, %arg0 : i32, i32
  }
}

</mosaic_0001>

<bundles_post_ra>
// kernel: tpu_custom_call.1
= control target key start
LH: loop header
LB: loop body
LE: loop exit
PB: predicated region body
PF: predicated region fallthrough
CT: control target
= control target key end

     0   :  { %8 = vsyncpa [#allocation4], 0  ;;  %s300_s0 = inlined_call_operand.hbm [shape: f32[8,1,64], index: 0, kind: input, shape index: {}]   ;;  %s301_s1 = inlined_call_operand.hbm [shape: f32[8,1,64], index: 1, kind: output, shape index: {0}]   ;;  %s302_s2 = inlined_call_operand.hbm [shape: f32[1,64], index: 2, kind: output, shape index: {1}]  }
   0x1   :  { %9 = vsyncpa [#allocation5], 0 }
   0x2   :  { %10 = vsyncpa [#allocation8], 0  ;;  %s218_s9 = smov [#allocation3]   ;;  %s146_s13 = scalar_lea.hbm %s300_s0, 128 }
   0x3   :  { %s16_s10 = sshll.u32 %s218_s9, 4  ;;  %p147_p0 = scmp.ne.s32.totalorder %s300_s0, %s146_s13  ;;  %s17_s10 = int_to_ptr.vmem [resolvable:$true] %s16_s10 }
   0x4   :  { %p150_p1 = scmp.lt.u32.totalorder %s146_s13, %s300_s0 }
   0x6   :  { %p152_p2 = pnand %p150_p1, %p147_p0 }
   0x8   :  { %155 = shalt.err (!%p152_p2)
}
   0x9   :  { %s156_s18 = scalar_lea.vmem %s17_s10, 128  ;;  %p161_p4 = scmp.lt.s32.totalorder %s17_s10, %s17_s10 }
   0xa   :  { %p157_p3 = scmp.ne.s32.totalorder %s17_s10, %s156_s18  ;;  %p162_p5 = scmp.lt.s32.totalorder %s156_s18, %s156_s18 }
   0xc   :  { %p163_p6 = por %p162_p5, %p161_p4 }
   0xe   :  { %p164_p7 = pnand %p163_p6, %p157_p3 }
  0x10   :  { %167 = shalt.err (!%p164_p7)
}
  0x11   :  { %s219_s19 = smov 16   ;;  %s220_s20 = smov 1  }
  0x12   :  { %22 = dma.hbm_to_vmem [thread:$0]  %s300_s0, 128, %s17_s10, [#allocation4], %s219_s19, %s219_s19, %s220_s20  }
  0x13   :  { %212 = dma.done.wait [#allocation4], 128  }
  0x14   :  { %213 = vsyncadd [#allocation4], 4294967168  ;;  %vm30_vm0 = vcmask 516096   ;;  %v221_v0 = vmov 0.0   ;;  %v33_v1 = vld [vmem:[#allocation3] sm:$0x1] }
  0x15   :  { %31 = vst.msk [vmem:[#allocation2] sm:$0x1] %vm30_vm0, %v221_v0  ;;  %v42_v5 = vld [vmem:[#allocation3 + $0x1] sm:$0x1]  ;;  %v51_v10 = vld [vmem:[#allocation3 + $0x2] sm:$0x1] }
  0x16   :  { %v60_v15 = vld [vmem:[#allocation3 + $0x3] sm:$0x1]  ;;  %v69_v20 = vld [vmem:[#allocation3 + $0x4] sm:$0x1]  ;;  %v78_v25 = vld [vmem:[#allocation3 + $0x5] sm:$0x1] }
  0x17   :  { %v87_v30 = vld [vmem:[#allocation3 + $0x6] sm:$0x1]  ;;  %v96_v35 = vld [vmem:[#allocation3 + $0x7] sm:$0x1]  ;;  %s222_s0 = smov [#allocation6]   ;;  %s223_s24 = smov [#allocation7]  }
  0x18   :  { %s114_s23 = sshll.u32 %s222_s0, 4  ;;  %s127_s25 = sshll.u32 %s223_s24, 4  ;;  %s115_s23 = int_to_ptr.vmem [resolvable:$true] %s114_s23  ;;  %s262_s25 = int_to_ptr.vmem [resolvable:$true] %s127_s25 }
  0x19   :  { %s168_s26 = scalar_lea.vmem %s115_s23, 128  ;;  %p173_p9 = scmp.lt.s32.totalorder %s115_s23, %s115_s23 }
  0x1a   :  { %p169_p8 = scmp.ne.s32.totalorder %s115_s23, %s168_s26  ;;  %p174_p10 = scmp.lt.s32.totalorder %s168_s26, %s168_s26 }
  0x1c   :  { %v32_v2 = vld [vmem:[#allocation2] sm:$0x1]  ;;  %p175_p11 = por %p174_p10, %p173_p9 }
  0x1d   :  { %v34_v3 = vadd.f32 %v33_v1, %v32_v2 }
  0x1e   :  { %p176_p12 = pnand %p175_p11, %p169_p8 }
  0x1f   :  { %vm35_vm1 = vcmp.ge.f32.partialorder %v34_v3, 1.0  ;;  %v39_v4 = vmul.f32 0.0, %v34_v3 }
  0x20   :  { %v36_v6 = vsel %vm35_vm1, 1.0, %v221_v0 }
  0x21   :  { %38 = vst.msk [vmem:[#allocation6] sm:$0x1] %vm30_vm0, %v36_v6  ;;  %v40_v7 = vsel %vm35_vm1, %v39_v4, %v34_v3 }
  0x22   :  { %v43_v8 = vadd.f32 %v42_v5, %v40_v7 }
  0x24   :  { %vm44_vm2 = vcmp.ge.f32.partialorder %v43_v8, 1.0  ;;  %v48_v9 = vmul.f32 0.0, %v43_v8 }
  0x25   :  { %v45_v11 = vsel %vm44_vm2, 1.0, %v221_v0 }
  0x26   :  { %47 = vst.msk [vmem:[#allocation6 + $0x1] sm:$0x1] %vm30_vm0, %v45_v11  ;;  %v49_v12 = vsel %vm44_vm2, %v48_v9, %v43_v8 }
  0x27   :  { %v52_v13 = vadd.f32 %v51_v10, %v49_v12 }
  0x29   :  { %vm53_vm3 = vcmp.ge.f32.partialorder %v52_v13, 1.0  ;;  %v57_v14 = vmul.f32 0.0, %v52_v13 }
  0x2a   :  { %v54_v16 = vsel %vm53_vm3, 1.0, %v221_v0 }
  0x2b   :  { %56 = vst.msk [vmem:[#allocation6 + $0x2] sm:$0x1] %vm30_vm0, %v54_v16  ;;  %v58_v17 = vsel %vm53_vm3, %v57_v14, %v52_v13 }
  0x2c   :  { %v61_v18 = vadd.f32 %v60_v15, %v58_v17 }
  0x2e   :  { %vm62_vm4 = vcmp.ge.f32.partialorder %v61_v18, 1.0  ;;  %v66_v19 = vmul.f32 0.0, %v61_v18 }
  0x2f   :  { %v63_v21 = vsel %vm62_vm4, 1.0, %v221_v0 }
  0x30   :  { %65 = vst.msk [vmem:[#allocation6 + $0x3] sm:$0x1] %vm30_vm0, %v63_v21  ;;  %v67_v22 = vsel %vm62_vm4, %v66_v19, %v61_v18 }
  0x31   :  { %v70_v23 = vadd.f32 %v69_v20, %v67_v22 }
  0x33   :  { %vm71_vm5 = vcmp.ge.f32.partialorder %v70_v23, 1.0  ;;  %v75_v24 = vmul.f32 0.0, %v70_v23 }
  0x34   :  { %v72_v26 = vsel %vm71_vm5, 1.0, %v221_v0 }
  0x35   :  { %74 = vst.msk [vmem:[#allocation6 + $0x4] sm:$0x1] %vm30_vm0, %v72_v26  ;;  %v76_v27 = vsel %vm71_vm5, %v75_v24, %v70_v23 }
  0x36   :  { %v79_v28 = vadd.f32 %v78_v25, %v76_v27 }
  0x38   :  { %vm80_vm6 = vcmp.ge.f32.partialorder %v79_v28, 1.0  ;;  %v84_v29 = vmul.f32 0.0, %v79_v28 }
  0x39   :  { %v81_v31 = vsel %vm80_vm6, 1.0, %v221_v0 }
  0x3a   :  { %83 = vst.msk [vmem:[#allocation6 + $0x5] sm:$0x1] %vm30_vm0, %v81_v31  ;;  %v85_v32 = vsel %vm80_vm6, %v84_v29, %v79_v28 }
  0x3b   :  { %v88_v33 = vadd.f32 %v87_v30, %v85_v32 }
  0x3d   :  { %vm89_vm7 = vcmp.ge.f32.partialorder %v88_v33, 1.0  ;;  %v93_v34 = vmul.f32 0.0, %v88_v33 }
  0x3e   :  { %v90_v36 = vsel %vm89_vm7, 1.0, %v221_v0 }
  0x3f   :  { %92 = vst.msk [vmem:[#allocation6 + $0x6] sm:$0x1] %vm30_vm0, %v90_v36  ;;  %v94_v37 = vsel %vm89_vm7, %v93_v34, %v88_v33 }
  0x40   :  { %v97_v38 = vadd.f32 %v96_v35, %v94_v37 }
  0x42   :  { %vm98_vm8 = vcmp.ge.f32.partialorder %v97_v38, 1.0  ;;  %v102_v39 = vmul.f32 0.0, %v97_v38 }
  0x43   :  { %v99_v40 = vsel %vm98_vm8, 1.0, %v221_v0 }
  0x44   :  { %101 = vst.msk [vmem:[#allocation6 + $0x7] sm:$0x1] %vm30_vm0, %v99_v40  ;;  %v103_v41 = vsel %vm98_vm8, %v102_v39, %v97_v38 }
  0x45   :  { %104 = vst.msk [vmem:[#allocation2] sm:$0x1] %vm30_vm0, %v103_v41  ;;  %108 = vst.msk [vmem:[#allocation7] sm:$0x1] %vm30_vm0, %v103_v41 }
  0x46   :  { %179 = shalt.err (!%p176_p12)
}
  0x47   :  { %s180_s29 = scalar_lea.hbm %s301_s1, 128 }
  0x48   :  { %p181_p13 = scmp.ne.s32.totalorder %s301_s1, %s180_s29  ;;  %p184_p0 = scmp.lt.u32.totalorder %s180_s29, %s301_s1 }
  0x4a   :  { %p186_p1 = pnand %p184_p0, %p181_p13 }
  0x4c   :  { %189 = shalt.err (!%p186_p1)
}
  0x4d   :  { %120 = dma.vmem_to_hbm [thread:$0]  %s115_s23, 128, %s301_s1, [#allocation5], %s219_s19, %s219_s19, %s220_s20  }
  0x4e   :  { %s190_s8 = scalar_lea.vmem %s262_s25, 16  ;;  %s194_s9 = scalar_lea.vmem %s262_s25, 32 }
  0x4f   :  { %p191_p2 = scmp.ne.s32.totalorder %s262_s25, %s190_s8  ;;  %p195_p3 = scmp.lt.s32.totalorder %s262_s25, %s262_s25 }
  0x50   :  { %p196_p4 = scmp.lt.s32.totalorder %s194_s9, %s190_s8 }
  0x52   :  { %p197_p5 = por %p196_p4, %p195_p3 }
  0x54   :  { %p198_p6 = pnand %p197_p5, %p191_p2 }
  0x56   :  { %201 = shalt.err (!%p198_p6)
}
  0x57   :  { %s202_s12 = scalar_lea.hbm %s302_s2, 16 }
  0x58   :  { %p203_p7 = scmp.ne.s32.totalorder %s302_s2, %s202_s12  ;;  %p206_p8 = scmp.lt.u32.totalorder %s202_s12, %s302_s2 }
  0x5a   :  { %p208_p9 = pnand %p206_p8, %p203_p7 }
  0x5c   :  { %211 = shalt.err (!%p208_p9)
}
  0x5d   :  { %130 = dma.vmem_to_hbm [thread:$0]  %s262_s25, 16, %s302_s2, [#allocation8]  }
  0x5e   :  { %214 = dma.done.wait [#allocation5], 128  }
  0x5f   :  { %215 = vsyncadd [#allocation5], 4294967168 }
  0x60   :  { %216 = dma.done.wait [#allocation8], 16  }
  0x61   :  { %217 = vsyncadd [#allocation8], 4294967280 }
  0x62   :  { %137 = vsyncpa [#allocation4], 1 }
  0x63   :  { %138 = vsyncpa [#allocation5], 1 }
  0x64   :  { %139 = vsyncpa [#allocation8], 1 }

</bundles_post_ra>
